<compile_context>
chip_gen: v5e
topology: v5e:2x2
jax: 0.10.0
libtpu: 0.0.40
codegen_flags: <defaults>
</compile_context>

<pallas_src>
import functools

import jax
import jax.numpy as jnp
from jax.experimental import pallas as pl
from jax.experimental.pallas import tpu as pltpu

LANE = 128      # vreg lane width
SUBLANE = 8     # vreg sublane count (f32)
MIB = 1024 * 1024


def _round_up(x, m):
    return ((x + m - 1) // m) * m


def _mlp_fused_kernel(x_ref, *refs, num_layers):
    """Fused MLP on one batch tile.

    refs = (w0, b0, w1, b1, ..., w_{L-1}, b_{L-1}, o_ref).
    Layers are statically unrolled; intermediate activations live in VMEM slabs.
    Matmuls run bf16 x bf16 on the MXU with f32 accumulation; bias add / ReLU in f32.
    """
    o_ref = refs[-1]
    h = x_ref[...].astype(jnp.float32)
    for i in range(num_layers):
        w = refs[2 * i][...]                               # bf16 (in_i, out_pad_i), VMEM-resident
        b = refs[2 * i + 1][...].astype(jnp.float32)       # (1, out_pad_i) -> broadcasts over rows
        h = jnp.dot(h.astype(jnp.bfloat16), w,
                    preferred_element_type=jnp.float32) + b
        if i < num_layers - 1:
            h = jnp.maximum(h, 0.0)                        # ReLU(0)=0 keeps pad lanes inert
    o_ref[...] = h.astype(o_ref.dtype)


def mlp_forward_pallas(x, padded_params, num_features, num_classes, *, tb_max=1024):
    """x: [B, num_features] f32 -> logits [B, num_classes] f32 (single fused kernel)."""
    B = x.shape[0]
    num_layers = len(padded_params)
    out_pad = padded_params[-1][0].shape[1]

    # ---- batch tiling (no materialized pad of x) ---------------------------------
    if B <= SUBLANE:
        TB = B                                             # single full-dim block
    else:
        # >= 2 grid steps (v7x megacore), sublane-aligned, capped by tb_max.
        TB = min(tb_max, _round_up(pl.cdiv(B, 2), SUBLANE))
    grid_b = pl.cdiv(B, TB)                                # partial last tile handled by Pallas

    flat_params = []
    for (w, b) in padded_params:
        flat_params.append(w)
        flat_params.append(b)

    # ---- VMEM budget (per TensorCore) ---------------------------------------------
    param_bytes = sum(int(a.size) * a.dtype.itemsize for a in flat_params)
    max_dim = max([num_features] + [w.shape[1] for (w, _) in padded_params])
    act_io_bytes = 2 * TB * (num_features + out_pad) * 4   # double-buffered x / out tiles
    inter_bytes = 3 * TB * max_dim * 4                     # live f32 slabs + bf16 dot operands
    needed = param_bytes + act_io_bytes + inter_bytes
    try:
        vmem_cap = int(pltpu.get_tpu_info().vmem_capacity_bytes)
    except Exception:
        vmem_cap = 64 * MIB                                # conservative: v7x per-TC size
    vmem_limit = int(min(max(int(needed * 1.5) + 4 * MIB, 32 * MIB), int(0.88 * vmem_cap)))
    # TODO(synk): if `needed` exceeds ~0.88*vmem_cap the weights no longer fit resident;
    # switch to a K/N-tiled streamed-weight pipeline in that regime.

    flops = 2 * B * sum(w.shape[0] * w.shape[1] for (w, _) in padded_params)
    bytes_accessed = int(x.size) * x.dtype.itemsize + B * out_pad * 4 + param_bytes

    kernel = functools.partial(_mlp_fused_kernel, num_layers=num_layers)

    def _build(single_buffer_weights):
        def resident_spec(shape):
            if single_buffer_weights:
                return pl.BlockSpec(shape, lambda i: (0, 0),
                                    pipeline_mode=pl.Buffered(1))
            return pl.BlockSpec(shape, lambda i: (0, 0))

        in_specs = [pl.BlockSpec((TB, num_features), lambda i: (i, 0))]   # x tile
        for (w, b) in padded_params:
            in_specs.append(resident_spec(w.shape))    # constant index_map -> VMEM-resident
            in_specs.append(resident_spec(b.shape))

        return pl.pallas_call(
            kernel,
            out_shape=jax.ShapeDtypeStruct((B, out_pad), jnp.float32),
            grid=(grid_b,),
            in_specs=in_specs,
            out_specs=pl.BlockSpec((TB, out_pad), lambda i: (i, 0)),
            compiler_params=pltpu.CompilerParams(
                dimension_semantics=("parallel",),       # shards batch tiles on v7x
                vmem_limit_bytes=vmem_limit,
            ),
            cost_estimate=pl.CostEstimate(
                flops=int(flops), transcendentals=0,
                bytes_accessed=int(bytes_accessed)),
        )

    try:
        out_padded = _build(single_buffer_weights=True)(x, *flat_params)
    except Exception:
        # Fallback: default (double) buffering for the resident weights.
        out_padded = _build(single_buffer_weights=False)(x, *flat_params)

    # Padded logit lanes are exactly zero (zero weight cols + zero bias); slice off.
    return out_padded[:, :num_classes]


def init_linear_params(key, in_dim, out_dim):
    """Deterministic init mimicking PyTorch nn.Linear (uniform +/- 1/sqrt(in))."""
    k_w, k_b = jax.random.split(key)
    bound = 1.0 / jnp.sqrt(jnp.array(in_dim, dtype=jnp.float32))
    # PyTorch weight is [out, in]; store transposed [in, out] for the kernel.
    w_t = jax.random.uniform(k_w, (in_dim, out_dim), dtype=jnp.float32,
                             minval=-bound, maxval=bound)
    b = jax.random.uniform(k_b, (out_dim,), dtype=jnp.float32,
                           minval=-bound, maxval=bound)
    return w_t, b


class SimpleClassifierPallas:
    """JAX/Pallas port of the PyTorch SimpleClassifier MLP (single fused kernel)."""

    def __init__(self, num_features, num_classes, layers, key):
        dims = [num_features] + list(layers) + [num_classes]
        keys = jax.random.split(key, len(dims) - 1)
        # Unpadded f32 params (source of truth / pure-JAX reference).
        self.params = [init_linear_params(keys[i], dims[i], dims[i + 1])
                       for i in range(len(dims) - 1)]
        self.dims = dims
        self.num_features = num_features
        self.num_classes = num_classes

        # Kernel-side params: bf16, out-dims lane-padded to 128.  The in-dim of
        # layer 0 stays unpadded (so x needs no feature padding); deeper in-dims
        # equal the previous layer's padded out-dim.  Pad rows/cols/bias lanes are
        # zero, so padded activation lanes are exactly 0 through ReLU.
        out_pads = [_round_up(d, LANE) for d in dims[1:]]
        self.padded_params = []
        in_dim = num_features
        for i, (w_t, b) in enumerate(self.params):
            out_dim, out_pad = dims[i + 1], out_pads[i]
            w_pad = (jnp.zeros((in_dim, out_pad), jnp.bfloat16)
                     .at[: dims[i], :out_dim].set(w_t.astype(jnp.bfloat16)))
            b_pad = (jnp.zeros((1, out_pad), jnp.bfloat16)
                     .at[0, :out_dim].set(b.astype(jnp.bfloat16)))
            self.padded_params.append((w_pad, b_pad))
            in_dim = out_pad

    def __call__(self, x):
        return mlp_forward_pallas(x, self.padded_params,
                                  self.num_features, self.num_classes)


if __name__ == "__main__":
    num_features = 32
    num_classes = 8
    hidden_layers = [64, 32]
    batch = 2

    root_key = jax.random.PRNGKey(0)
    k_model, k_x = jax.random.split(root_key)

    model = SimpleClassifierPallas(num_features, num_classes, hidden_layers, k_model)
    x = jax.random.normal(k_x, (batch, num_features), dtype=jnp.float32)

    out = jax.block_until_ready(model(x))
    assert out.shape == (batch, num_classes)

    n = len(model.params)

    # Reference 1: mirrors the kernel's numerics (bf16 operands, f32 accumulation).
    ref_bf16 = x
    for i, (w_t, b) in enumerate(model.params):
        ref_bf16 = jnp.dot(ref_bf16.astype(jnp.bfloat16), w_t.astype(jnp.bfloat16),
                           preferred_element_type=jnp.float32)
        ref_bf16 = ref_bf16 + b.astype(jnp.bfloat16).astype(jnp.float32)
        if i < n - 1:
            ref_bf16 = jnp.maximum(ref_bf16, 0.0)
    assert jnp.allclose(out, ref_bf16, atol=1e-2, rtol=1e-2), \
        float(jnp.max(jnp.abs(out - ref_bf16)))

    # Reference 2: plain f32 forward (PyTorch semantics); loose tolerance for bf16 weights.
    ref_f32 = x
    for i, (w_t, b) in enumerate(model.params):
        ref_f32 = ref_f32 @ w_t + b
        if i < n - 1:
            ref_f32 = jnp.maximum(ref_f32, 0.0)
    assert jnp.allclose(out, ref_f32, atol=1e-1, rtol=1e-1), \
        float(jnp.max(jnp.abs(out - ref_f32)))

    print("KERNEL_OK")
</pallas_src>

<mosaic_0001>
module attributes {stable_mosaic.version = 11 : i64} {
  func.func @_mlp_fused_kernel(%arg0: i32, %arg1: memref<2x32xf32, #tpu.memory_space<vmem>>, %arg2: memref<32x128xbf16, #tpu.memory_space<vmem>>, %arg3: memref<1x128xbf16, #tpu.memory_space<vmem>>, %arg4: memref<128x128xbf16, #tpu.memory_space<vmem>>, %arg5: memref<1x128xbf16, #tpu.memory_space<vmem>>, %arg6: memref<128x128xbf16, #tpu.memory_space<vmem>>, %arg7: memref<1x128xbf16, #tpu.memory_space<vmem>>, %arg8: memref<2x128xf32, #tpu.memory_space<vmem>>) attributes {dimension_semantics = [#tpu.dimension_semantics<parallel>], iteration_bounds = array<i64: 1>, scalar_prefetch = 0 : i64, scratch_operands = 0 : i64, tpu.core_type = #tpu.core_type<tc>, window_params = [{transform_indices = @transform_0, window_bounds = array<i64: 2, 32>}, {pipeline_mode = #tpu.pipeline_mode<synchronous>, transform_indices = @transform_1, window_bounds = array<i64: 32, 128>}, {pipeline_mode = #tpu.pipeline_mode<synchronous>, transform_indices = @transform_2, window_bounds = array<i64: 1, 128>}, {pipeline_mode = #tpu.pipeline_mode<synchronous>, transform_indices = @transform_3, window_bounds = array<i64: 128, 128>}, {pipeline_mode = #tpu.pipeline_mode<synchronous>, transform_indices = @transform_4, window_bounds = array<i64: 1, 128>}, {pipeline_mode = #tpu.pipeline_mode<synchronous>, transform_indices = @transform_5, window_bounds = array<i64: 128, 128>}, {pipeline_mode = #tpu.pipeline_mode<synchronous>, transform_indices = @transform_6, window_bounds = array<i64: 1, 128>}, {transform_indices = @transform_7, window_bounds = array<i64: 2, 128>}]} {
    %c0 = arith.constant 0 : index
    %c0_0 = arith.constant 0 : index
    %0 = vector.load %arg1[%c0, %c0_0] : memref<2x32xf32, #tpu.memory_space<vmem>>, vector<2x32xf32>
    %c0_1 = arith.constant 0 : index
    %c0_2 = arith.constant 0 : index
    %1 = vector.load %arg2[%c0_1, %c0_2] : memref<32x128xbf16, #tpu.memory_space<vmem>>, vector<32x128xbf16>
    %c0_3 = arith.constant 0 : index
    %c0_4 = arith.constant 0 : index
    %2 = vector.load %arg3[%c0_3, %c0_4] : memref<1x128xbf16, #tpu.memory_space<vmem>>, vector<1x128xbf16>
    %3 = arith.extf %2 : vector<1x128xbf16> to vector<1x128xf32>
    %4 = arith.truncf %0 : vector<2x32xf32> to vector<2x32xbf16>
    %cst = arith.constant dense<0.000000e+00> : vector<2x128xf32>
    %5 = tpu.matmul %4, %1, %cst {dimension_numbers = #tpu.dot_dimension_numbers<[1], [0], [0], [1], [0, 0, 1, 1], [], []>} : vector<2x32xbf16>, vector<32x128xbf16>, vector<2x128xf32> -> vector<2x128xf32>
    %6 = vector.broadcast %3 : vector<1x128xf32> to vector<2x128xf32>
    %7 = arith.addf %5, %6 : vector<2x128xf32>
    %cst_5 = arith.constant 0.000000e+00 : f32
    %8 = vector.broadcast %cst_5 : f32 to vector<2x128xf32>
    %9 = arith.maximumf %7, %8 : vector<2x128xf32>
    %c0_6 = arith.constant 0 : index
    %c0_7 = arith.constant 0 : index
    %10 = vector.load %arg4[%c0_6, %c0_7] : memref<128x128xbf16, #tpu.memory_space<vmem>>, vector<128x128xbf16>
    %c0_8 = arith.constant 0 : index
    %c0_9 = arith.constant 0 : index
    %11 = vector.load %arg5[%c0_8, %c0_9] : memref<1x128xbf16, #tpu.memory_space<vmem>>, vector<1x128xbf16>
    %12 = arith.extf %11 : vector<1x128xbf16> to vector<1x128xf32>
    %13 = arith.truncf %9 : vector<2x128xf32> to vector<2x128xbf16>
    %cst_10 = arith.constant dense<0.000000e+00> : vector<2x128xf32>
    %14 = tpu.matmul %13, %10, %cst_10 {dimension_numbers = #tpu.dot_dimension_numbers<[1], [0], [0], [1], [0, 0, 1, 1], [], []>} : vector<2x128xbf16>, vector<128x128xbf16>, vector<2x128xf32> -> vector<2x128xf32>
    %15 = vector.broadcast %12 : vector<1x128xf32> to vector<2x128xf32>
    %16 = arith.addf %14, %15 : vector<2x128xf32>
    %cst_11 = arith.constant 0.000000e+00 : f32
    %17 = vector.broadcast %cst_11 : f32 to vector<2x128xf32>
    %18 = arith.maximumf %16, %17 : vector<2x128xf32>
    %c0_12 = arith.constant 0 : index
    %c0_13 = arith.constant 0 : index
    %19 = vector.load %arg6[%c0_12, %c0_13] : memref<128x128xbf16, #tpu.memory_space<vmem>>, vector<128x128xbf16>
    %c0_14 = arith.constant 0 : index
    %c0_15 = arith.constant 0 : index
    %20 = vector.load %arg7[%c0_14, %c0_15] : memref<1x128xbf16, #tpu.memory_space<vmem>>, vector<1x128xbf16>
    %21 = arith.extf %20 : vector<1x128xbf16> to vector<1x128xf32>
    %22 = arith.truncf %18 : vector<2x128xf32> to vector<2x128xbf16>
    %cst_16 = arith.constant dense<0.000000e+00> : vector<2x128xf32>
    %23 = tpu.matmul %22, %19, %cst_16 {dimension_numbers = #tpu.dot_dimension_numbers<[1], [0], [0], [1], [0, 0, 1, 1], [], []>} : vector<2x128xbf16>, vector<128x128xbf16>, vector<2x128xf32> -> vector<2x128xf32>
    %24 = vector.broadcast %21 : vector<1x128xf32> to vector<2x128xf32>
    %25 = arith.addf %23, %24 : vector<2x128xf32>
    %c0_17 = arith.constant 0 : index
    %c0_18 = arith.constant 0 : index
    %26 = vector.load %arg8[%c0_17, %c0_18] : memref<2x128xf32, #tpu.memory_space<vmem>>, vector<2x128xf32>
    tpu.vector_store %arg8[%c0_17, %c0_18], %25 {strides = array<i32>} : memref<2x128xf32, #tpu.memory_space<vmem>>, vector<2x128xf32>,
    return
  }
  func.func @transform_0(%arg0: i32) -> (i32, i32) {
    %c0_i32 = arith.constant 0 : i32
    %c0_i32_0 = arith.constant 0 : i32
    return %arg0, %c0_i32 : i32, i32
  }
  func.func @transform_1(%arg0: i32) -> (i32, i32) {
    %c0_i32 = arith.constant 0 : i32
    %c0_i32_0 = arith.constant 0 : i32
    %c0_i32_1 = arith.constant 0 : i32
    return %c0_i32, %c0_i32_0 : i32, i32
  }
  func.func @transform_2(%arg0: i32) -> (i32, i32) {
    %c0_i32 = arith.constant 0 : i32
    %c0_i32_0 = arith.constant 0 : i32
    %c0_i32_1 = arith.constant 0 : i32
    return %c0_i32, %c0_i32_0 : i32, i32
  }
  func.func @transform_3(%arg0: i32) -> (i32, i32) {
    %c0_i32 = arith.constant 0 : i32
    %c0_i32_0 = arith.constant 0 : i32
    %c0_i32_1 = arith.constant 0 : i32
    return %c0_i32, %c0_i32_0 : i32, i32
  }
  func.func @transform_4(%arg0: i32) -> (i32, i32) {
    %c0_i32 = arith.constant 0 : i32
    %c0_i32_0 = arith.constant 0 : i32
    %c0_i32_1 = arith.constant 0 : i32
    return %c0_i32, %c0_i32_0 : i32, i32
  }
  func.func @transform_5(%arg0: i32) -> (i32, i32) {
    %c0_i32 = arith.constant 0 : i32
    %c0_i32_0 = arith.constant 0 : i32
    %c0_i32_1 = arith.constant 0 : i32
    return %c0_i32, %c0_i32_0 : i32, i32
  }
  func.func @transform_6(%arg0: i32) -> (i32, i32) {
    %c0_i32 = arith.constant 0 : i32
    %c0_i32_0 = arith.constant 0 : i32
    %c0_i32_1 = arith.constant 0 : i32
    return %c0_i32, %c0_i32_0 : i32, i32
  }
  func.func @transform_7(%arg0: i32) -> (i32, i32) {
    %c0_i32 = arith.constant 0 : i32
    %c0_i32_0 = arith.constant 0 : i32
    return %arg0, %c0_i32 : i32, i32
  }
}

module attributes {stable_mosaic.version = 11 : i64} {
  func.func @_mlp_fused_kernel(%arg0: i32, %arg1: memref<2x32xf32, #tpu.memory_space<vmem>>, %arg2: memref<32x128xbf16, #tpu.memory_space<vmem>>, %arg3: memref<1x128xbf16, #tpu.memory_space<vmem>>, %arg4: memref<128x128xbf16, #tpu.memory_space<vmem>>, %arg5: memref<1x128xbf16, #tpu.memory_space<vmem>>, %arg6: memref<128x128xbf16, #tpu.memory_space<vmem>>, %arg7: memref<1x128xbf16, #tpu.memory_space<vmem>>, %arg8: memref<2x128xf32, #tpu.memory_space<vmem>>) attributes {dimension_semantics = [#tpu.dimension_semantics<parallel>], iteration_bounds = array<i64: 1>, scalar_prefetch = 0 : i64, scratch_operands = 0 : i64, tpu.core_type = #tpu.core_type<tc>, window_params = [{transform_indices = @transform_0, window_bounds = array<i64: 2, 32>}, {pipeline_mode = #tpu.pipeline_mode<synchronous>, transform_indices = @transform_1, window_bounds = array<i64: 32, 128>}, {pipeline_mode = #tpu.pipeline_mode<synchronous>, transform_indices = @transform_2, window_bounds = array<i64: 1, 128>}, {pipeline_mode = #tpu.pipeline_mode<synchronous>, transform_indices = @transform_3, window_bounds = array<i64: 128, 128>}, {pipeline_mode = #tpu.pipeline_mode<synchronous>, transform_indices = @transform_4, window_bounds = array<i64: 1, 128>}, {pipeline_mode = #tpu.pipeline_mode<synchronous>, transform_indices = @transform_5, window_bounds = array<i64: 128, 128>}, {pipeline_mode = #tpu.pipeline_mode<synchronous>, transform_indices = @transform_6, window_bounds = array<i64: 1, 128>}, {transform_indices = @transform_7, window_bounds = array<i64: 2, 128>}]} {
    %c0 = arith.constant 0 : index
    %c0_0 = arith.constant 0 : index
    %0 = vector.load %arg1[%c0, %c0_0] : memref<2x32xf32, #tpu.memory_space<vmem>>, vector<2x32xf32>
    %c0_1 = arith.constant 0 : index
    %c0_2 = arith.constant 0 : index
    %1 = vector.load %arg2[%c0_1, %c0_2] : memref<32x128xbf16, #tpu.memory_space<vmem>>, vector<32x128xbf16>
    %c0_3 = arith.constant 0 : index
    %c0_4 = arith.constant 0 : index
    %2 = vector.load %arg3[%c0_3, %c0_4] : memref<1x128xbf16, #tpu.memory_space<vmem>>, vector<1x128xbf16>
    %3 = arith.extf %2 : vector<1x128xbf16> to vector<1x128xf32>
    %4 = arith.truncf %0 : vector<2x32xf32> to vector<2x32xbf16>
    %cst = arith.constant dense<0.000000e+00> : vector<2x128xf32>
    %5 = tpu.matmul %4, %1, %cst {dimension_numbers = #tpu.dot_dimension_numbers<[1], [0], [0], [1], [0, 0, 1, 1], [], []>} : vector<2x32xbf16>, vector<32x128xbf16>, vector<2x128xf32> -> vector<2x128xf32>
    %6 = vector.broadcast %3 : vector<1x128xf32> to vector<2x128xf32>
    %7 = arith.addf %5, %6 : vector<2x128xf32>
    %cst_5 = arith.constant 0.000000e+00 : f32
    %8 = vector.broadcast %cst_5 : f32 to vector<2x128xf32>
    %9 = arith.maximumf %7, %8 : vector<2x128xf32>
    %c0_6 = arith.constant 0 : index
    %c0_7 = arith.constant 0 : index
    %10 = vector.load %arg4[%c0_6, %c0_7] : memref<128x128xbf16, #tpu.memory_space<vmem>>, vector<128x128xbf16>
    %c0_8 = arith.constant 0 : index
    %c0_9 = arith.constant 0 : index
    %11 = vector.load %arg5[%c0_8, %c0_9] : memref<1x128xbf16, #tpu.memory_space<vmem>>, vector<1x128xbf16>
    %12 = arith.extf %11 : vector<1x128xbf16> to vector<1x128xf32>
    %13 = arith.truncf %9 : vector<2x128xf32> to vector<2x128xbf16>
    %cst_10 = arith.constant dense<0.000000e+00> : vector<2x128xf32>
    %14 = tpu.matmul %13, %10, %cst_10 {dimension_numbers = #tpu.dot_dimension_numbers<[1], [0], [0], [1], [0, 0, 1, 1], [], []>} : vector<2x128xbf16>, vector<128x128xbf16>, vector<2x128xf32> -> vector<2x128xf32>
    %15 = vector.broadcast %12 : vector<1x128xf32> to vector<2x128xf32>
    %16 = arith.addf %14, %15 : vector<2x128xf32>
    %cst_11 = arith.constant 0.000000e+00 : f32
    %17 = vector.broadcast %cst_11 : f32 to vector<2x128xf32>
    %18 = arith.maximumf %16, %17 : vector<2x128xf32>
    %c0_12 = arith.constant 0 : index
    %c0_13 = arith.constant 0 : index
    %19 = vector.load %arg6[%c0_12, %c0_13] : memref<128x128xbf16, #tpu.memory_space<vmem>>, vector<128x128xbf16>
    %c0_14 = arith.constant 0 : index
    %c0_15 = arith.constant 0 : index
    %20 = vector.load %arg7[%c0_14, %c0_15] : memref<1x128xbf16, #tpu.memory_space<vmem>>, vector<1x128xbf16>
    %21 = arith.extf %20 : vector<1x128xbf16> to vector<1x128xf32>
    %22 = arith.truncf %18 : vector<2x128xf32> to vector<2x128xbf16>
    %cst_16 = arith.constant dense<0.000000e+00> : vector<2x128xf32>
    %23 = tpu.matmul %22, %19, %cst_16 {dimension_numbers = #tpu.dot_dimension_numbers<[1], [0], [0], [1], [0, 0, 1, 1], [], []>} : vector<2x128xbf16>, vector<128x128xbf16>, vector<2x128xf32> -> vector<2x128xf32>
    %24 = vector.broadcast %21 : vector<1x128xf32> to vector<2x128xf32>
    %25 = arith.addf %23, %24 : vector<2x128xf32>
    %c0_17 = arith.constant 0 : index
    %c0_18 = arith.constant 0 : index
    %26 = vector.load %arg8[%c0_17, %c0_18] : memref<2x128xf32, #tpu.memory_space<vmem>>, vector<2x128xf32>
    tpu.vector_store %arg8[%c0_17, %c0_18], %25 {strides = array<i32>} : memref<2x128xf32, #tpu.memory_space<vmem>>, vector<2x128xf32>,
    return
  }
  func.func @transform_0(%arg0: i32) -> (i32, i32) {
    %c0_i32 = arith.constant 0 : i32
    %c0_i32_0 = arith.constant 0 : i32
    return %arg0, %c0_i32 : i32, i32
  }
  func.func @transform_1(%arg0: i32) -> (i32, i32) {
    %c0_i32 = arith.constant 0 : i32
    %c0_i32_0 = arith.constant 0 : i32
    %c0_i32_1 = arith.constant 0 : i32
    return %c0_i32, %c0_i32_0 : i32, i32
  }
  func.func @transform_2(%arg0: i32) -> (i32, i32) {
    %c0_i32 = arith.constant 0 : i32
    %c0_i32_0 = arith.constant 0 : i32
    %c0_i32_1 = arith.constant 0 : i32
    return %c0_i32, %c0_i32_0 : i32, i32
  }
  func.func @transform_3(%arg0: i32) -> (i32, i32) {
    %c0_i32 = arith.constant 0 : i32
    %c0_i32_0 = arith.constant 0 : i32
    %c0_i32_1 = arith.constant 0 : i32
    return %c0_i32, %c0_i32_0 : i32, i32
  }
  func.func @transform_4(%arg0: i32) -> (i32, i32) {
    %c0_i32 = arith.constant 0 : i32
    %c0_i32_0 = arith.constant 0 : i32
    %c0_i32_1 = arith.constant 0 : i32
    return %c0_i32, %c0_i32_0 : i32, i32
  }
  func.func @transform_5(%arg0: i32) -> (i32, i32) {
    %c0_i32 = arith.constant 0 : i32
    %c0_i32_0 = arith.constant 0 : i32
    %c0_i32_1 = arith.constant 0 : i32
    return %c0_i32, %c0_i32_0 : i32, i32
  }
  func.func @transform_6(%arg0: i32) -> (i32, i32) {
    %c0_i32 = arith.constant 0 : i32
    %c0_i32_0 = arith.constant 0 : i32
    %c0_i32_1 = arith.constant 0 : i32
    return %c0_i32, %c0_i32_0 : i32, i32
  }
  func.func @transform_7(%arg0: i32) -> (i32, i32) {
    %c0_i32 = arith.constant 0 : i32
    %c0_i32_0 = arith.constant 0 : i32
    return %arg0, %c0_i32 : i32, i32
  }
}

</mosaic_0001>

<bundles_post_ra>
// kernel: tpu_custom_call.1
= control target key start
LH: loop header
LB: loop body
LE: loop exit
PB: predicated region body
PF: predicated region fallthrough
CT: control target
= control target key end

     0   :  { %12 = vsyncpa [#allocation3], 0  ;;  %s608_s0 = inlined_call_operand.hbm [shape: f32[2,32], index: 0, kind: input, shape index: {}]   ;;  %s609_s1 = inlined_call_operand.hbm [shape: bf16[32,128], index: 1, kind: input, shape index: {}]   ;;  %s610_s2 = inlined_call_operand.vmem [shape: bf16[1,128], index: 2, kind: input, shape index: {}]   ;;  %s611_s3 = inlined_call_operand.hbm [shape: bf16[128,128], index: 3, kind: input, shape index: {}]   ;;  %s612_s4 = inlined_call_operand.vmem [shape: bf16[1,128], index: 4, kind: input, shape index: {}]   ;;  %s613_s5 = inlined_call_operand.hbm [shape: bf16[128,128], index: 5, kind: input, shape index: {}]   ;;  %s614_s6 = inlined_call_operand.vmem [shape: bf16[1,128], index: 6, kind: input, shape index: {}]   ;;  %s615_s7 = inlined_call_operand.hbm [shape: f32[2,128], index: 7, kind: output, shape index: {}]  }
   0x1   :  { %13 = vsyncpa [#allocation6], 0 }
   0x2   :  { %14 = vsyncpa [#allocation9], 0  ;;  %s31_s26 = sshll.u32 %s609_s1, 4  ;;  %s32_s26 = int_to_ptr.hbm [resolvable:$true] %s31_s26 }
   0x3   :  { %15 = vsyncpa [#allocation4], 0  ;;  %s537_s27 = smov [#allocation5]   ;;  %s21_s8 = sshll.u32 %s608_s0, 4  ;;  %s22_s8 = int_to_ptr.hbm [resolvable:$true] %s21_s8 }
   0x4   :  { %s33_s28 = sshll.u32 %s537_s27, 4  ;;  %s538_s9 = smov 64   ;;  %s34_s28 = int_to_ptr.vmem [resolvable:$true] %s33_s28 }
   0x5   :  { %s539_s10 = smov 4   ;;  %s540_s11 = smov [#allocation2]  }
   0x6   :  { %39 = dma.hbm_to_vmem [thread:$0]  %s32_s26, 256, %s34_s28, [#allocation6], %s538_s9, %s538_s9, %s539_s10  }
   0x7   :  { %s23_s12 = sshll.u32 %s540_s11, 4  ;;  %s46_s15 = sshll.u32 %s611_s3, 4  ;;  %s24_s12 = int_to_ptr.vmem [resolvable:$true] %s23_s12  ;;  %s47_s15 = int_to_ptr.hbm [resolvable:$true] %s46_s15 }
   0x8   :  { %26 = dma.hbm_to_vmem [thread:$0]  %s22_s8, 32, %s24_s12, [#allocation3]  }
   0x9   :  { %s61_s17 = sshll.u32 %s613_s5, 4  ;;  %s541_s18 = smov [#allocation7]   ;;  %s62_s17 = int_to_ptr.hbm [resolvable:$true] %s61_s17 }
   0xa   :  { %s48_s19 = sshll.u32 %s541_s18, 4  ;;  %s542_s0 = smov [#allocation8]   ;;  %s49_s19 = int_to_ptr.vmem [resolvable:$true] %s48_s19 }
   0xb   :  { %54 = dma.hbm_to_vmem [thread:$0]  %s47_s15, 1024, %s49_s19, [#allocation6], %s538_s9, %s538_s9, %s539_s10  }
   0xc   :  { %s63_s20 = sshll.u32 %s542_s0, 4  ;;  %s64_s20 = int_to_ptr.vmem [resolvable:$true] %s63_s20 }
   0xd   :  { %69 = dma.hbm_to_vmem [thread:$0]  %s62_s17, 1024, %s64_s20, [#allocation9], %s538_s9, %s538_s9, %s539_s10  }
   0xe   :  { %529 = dma.done.wait [#allocation3], 32  }
   0xf   :  { %530 = vsyncadd [#allocation3], 4294967264 }
  0x10   :  { %531 = dma.done.wait [#allocation6], 1280  }
  0x11   :  { %532 = vsyncadd [#allocation6], 4294966016 }
  0x12   :  { %533 = dma.done.wait [#allocation9], 1024  }
  0x13   :  { %534 = vsyncadd [#allocation9], 4294966272  ;;  %v385_v0 = vld [vmem:[#allocation5 + $0x8] sm:$0xff]  ;;  %v384_v2 = vld [vmem:[#allocation5] sm:$0xff]  ;;  %vm110_vm0 = vcmask 261120   ;;  %s543_s24 = smov [#allocation10]  }
  0x14   :  { %v393_v1 = vld [vmem:[#allocation7 + $0x38] sm:$0xff]  ;;  %120 = vmatpush.bf16.msra.mxu0 %v385_v0  ;;  %v89_v3 = vld [vmem:[#allocation2] sm:$0x3]  ;;  %v392_v4 = vld [vmem:[#allocation7 + $0x30] sm:$0xff]  ;;  %s297_s25 = sshll.u32 %s543_s24, 4  ;;  %s298_s25 = int_to_ptr.vmem [resolvable:$true] %s297_s25 }
  0x15   :  { %196 = vmatpush.bf16.msra.mxu1 %v393_v1  ;;  %v96_v5 = vpack.c.bf16 %v89_v3, %v89_v3  ;;  %v391_v6 = vld [vmem:[#allocation7 + $0x28] sm:$0xff]  ;;  %v390_v7 = vld [vmem:[#allocation7 + $0x20] sm:$0xff]  ;;  %v389_v8 = vld [vmem:[#allocation7 + $0x18] sm:$0xff] }
  0x16   :  { %v388_v9 = vld [vmem:[#allocation7 + $0x10] sm:$0xff]  ;;  %v387_v10 = vld [vmem:[#allocation7 + $0x8] sm:$0xff]  ;;  %v386_v11 = vld [vmem:[#allocation7] sm:$0xff] }
  0x17   :  { %v401_v12 = vld [vmem:[#allocation8 + $0x38] sm:$0xff]  ;;  %v400_v13 = vld [vmem:[#allocation8 + $0x30] sm:$0xff]  ;;  %v399_v14 = vld [vmem:[#allocation8 + $0x28] sm:$0xff] }
  0x18   :  { %121 = vmatpush.bf16.msra.mxu0 %v384_v2  ;;  %278 = vmatpush.bf16.msra.mxu2 %v401_v12  ;;  %v398_v15 = vld [vmem:[#allocation8 + $0x20] sm:$0xff]  ;;  %v94_v16 = vld [vmem:[%s610_s2] sm:$0x1]  ;;  %v397_v17 = vld [vmem:[#allocation8 + $0x18] sm:$0xff] }
  0x19   :  { %197 = vmatpush.bf16.msra.mxu1 %v392_v4  ;;  %v95_v18 = vunpack.c.l.bf16 %v94_v16  ;;  %v396_v19 = vld [vmem:[#allocation8 + $0x10] sm:$0xff]  ;;  %v395_v26 = vld [vmem:[#allocation8 + $0x8] sm:$0xff]  ;;  %v394_v27 = vld [vmem:[#allocation8] sm:$0xff] }
  0x1a   :  { %v144_v28 = vld [vmem:[%s612_s4] sm:$0x1]  ;;  %s299_s4 = sshll.u32 %s615_s7, 4  ;;  %s300_s4 = int_to_ptr.hbm [resolvable:$true] %s299_s4 }
  0x1b   :  { %319 = vmatmul.msk.bf16.vlgmr.msra.gmra.mxu0 %vm110_vm0, %v96_v5  ;;  %v97_v20 = vperm.slane %v95_v18, 0  ;;  %v145_v29 = vunpack.c.l.bf16 %v144_v28  ;;  %v226_v36 = vld [vmem:[%s614_s6] sm:$0x1] }
  0x1c   :  { %279 = vmatpush.bf16.msra.mxu2 %v400_v13  ;;  %v227_v37 = vunpack.c.l.bf16 %v226_v36 }
  0x1d   :  { %198 = vmatpush.bf16.msra.mxu1 %v391_v6  ;;  %v147_v30 = vperm.slane %v145_v29, 0 }
  0x1e   :  { %v229_v38 = vperm.slane %v227_v37, 0 }
  0x20   :  { %280 = vmatpush.bf16.msra.mxu2 %v399_v14 }
  0x21   :  { %199 = vmatpush.bf16.msra.mxu1 %v390_v7 }
  0x24   :  { %281 = vmatpush.bf16.msra.mxu2 %v398_v15 }
  0x25   :  { %200 = vmatpush.bf16.msra.mxu1 %v389_v8 }
  0x28   :  { %282 = vmatpush.bf16.msra.mxu2 %v397_v17 }
  0x29   :  { %201 = vmatpush.bf16.msra.mxu1 %v388_v9 }
  0x2c   :  { %283 = vmatpush.bf16.msra.mxu2 %v396_v19 }
  0x2d   :  { %202 = vmatpush.bf16.msra.mxu1 %v387_v10 }
  0x30   :  { %284 = vmatpush.bf16.msra.mxu2 %v395_v26 }
  0x31   :  { %203 = vmatpush.bf16.msra.mxu1 %v386_v11 }
  0x34   :  { %285 = vmatpush.bf16.msra.mxu2 %v394_v27 }
  0x98   :  { %v123_v21 = vpop.f32.mrf.mxu0 }
  0x99   :  { %v124_v22 = vadd.f32 %v123_v21, %v97_v20 }
  0x9b   :  { %v127_v23 = vmax.f32 %v124_v22, 0.0 }
  0x9d   :  { %v146_v24 = vpack.c.bf16 %v127_v23, %v127_v23 }
  0x9f   :  { %204 = vmatmul.bf16.vlgmr.msra.gmra.mxu1 %v146_v24 }
  0xa0   :  { %v125_v25 = vpop.f32.mrf.mxu0 }
 0x11c   :  { %v205_v31 = vpop.f32.mrf.mxu1 }
 0x11d   :  { %v206_v32 = vadd.f32 %v205_v31, %v147_v30 }
 0x11f   :  { %v209_v33 = vmax.f32 %v206_v32, 0.0 }
 0x121   :  { %v228_v34 = vpack.c.bf16 %v209_v33, %v209_v33 }
 0x123   :  { %286 = vmatmul.bf16.vlgmr.msra.gmra.mxu2 %v228_v34 }
 0x124   :  { %v207_v35 = vpop.f32.mrf.mxu1 }
 0x1a6   :  { %v287_v39 = vpop.f32.mrf.mxu2 }
 0x1a7   :  { %v288_v40 = vadd.f32 %v287_v39, %v229_v38 }
 0x1a9   :  { %291 = vst [vmem:[#allocation10] sm:$0x3] %v288_v40 }
 0x1aa   :  { %302 = dma.vmem_to_hbm [thread:$0]  %s298_s25, 32, %s300_s4, [#allocation4]  }
 0x1ae   :  { %v289_v41 = vpop.f32.mrf.mxu2 }
 0x1af   :  { %535 = dma.done.wait [#allocation4], 32  }
 0x1b0   :  { %536 = vsyncadd [#allocation4], 4294967264 }
 0x1b1   :  { %307 = vsyncpa [#allocation3], 1 }
 0x1b2   :  { %308 = vsyncpa [#allocation6], 1 }
 0x1b3   :  { %309 = vsyncpa [#allocation9], 1 }
 0x1b4   :  { %310 = vsyncpa [#allocation4], 1 }

// kernel: tpu_custom_call.1
= control target key start
LH: loop header
LB: loop body
LE: loop exit
PB: predicated region body
PF: predicated region fallthrough
CT: control target
= control target key end

     0   :  { %12 = vsyncpa [#allocation3], 0  ;;  %s608_s0 = inlined_call_operand.hbm [shape: f32[2,32], index: 0, kind: input, shape index: {}]   ;;  %s609_s1 = inlined_call_operand.hbm [shape: bf16[32,128], index: 1, kind: input, shape index: {}]   ;;  %s610_s2 = inlined_call_operand.vmem [shape: bf16[1,128], index: 2, kind: input, shape index: {}]   ;;  %s611_s3 = inlined_call_operand.hbm [shape: bf16[128,128], index: 3, kind: input, shape index: {}]   ;;  %s612_s4 = inlined_call_operand.vmem [shape: bf16[1,128], index: 4, kind: input, shape index: {}]   ;;  %s613_s5 = inlined_call_operand.hbm [shape: bf16[128,128], index: 5, kind: input, shape index: {}]   ;;  %s614_s6 = inlined_call_operand.vmem [shape: bf16[1,128], index: 6, kind: input, shape index: {}]   ;;  %s615_s7 = inlined_call_operand.hbm [shape: f32[2,128], index: 7, kind: output, shape index: {}]  }
   0x1   :  { %13 = vsyncpa [#allocation6], 0 }
   0x2   :  { %14 = vsyncpa [#allocation9], 0  ;;  %s31_s26 = sshll.u32 %s609_s1, 4  ;;  %s32_s26 = int_to_ptr.hbm [resolvable:$true] %s31_s26 }
   0x3   :  { %15 = vsyncpa [#allocation4], 0  ;;  %s537_s27 = smov [#allocation5]   ;;  %s21_s8 = sshll.u32 %s608_s0, 4  ;;  %s22_s8 = int_to_ptr.hbm [resolvable:$true] %s21_s8 }
   0x4   :  { %s33_s28 = sshll.u32 %s537_s27, 4  ;;  %s538_s9 = smov 64   ;;  %s34_s28 = int_to_ptr.vmem [resolvable:$true] %s33_s28 }
   0x5   :  { %s539_s10 = smov 4   ;;  %s540_s11 = smov [#allocation2]  }
   0x6   :  { %39 = dma.hbm_to_vmem [thread:$0]  %s32_s26, 256, %s34_s28, [#allocation6], %s538_s9, %s538_s9, %s539_s10  }
   0x7   :  { %s23_s12 = sshll.u32 %s540_s11, 4  ;;  %s46_s15 = sshll.u32 %s611_s3, 4  ;;  %s24_s12 = int_to_ptr.vmem [resolvable:$true] %s23_s12  ;;  %s47_s15 = int_to_ptr.hbm [resolvable:$true] %s46_s15 }
   0x8   :  { %26 = dma.hbm_to_vmem [thread:$0]  %s22_s8, 32, %s24_s12, [#allocation3]  }
   0x9   :  { %s61_s17 = sshll.u32 %s613_s5, 4  ;;  %s541_s18 = smov [#allocation7]   ;;  %s62_s17 = int_to_ptr.hbm [resolvable:$true] %s61_s17 }
   0xa   :  { %s48_s19 = sshll.u32 %s541_s18, 4  ;;  %s542_s0 = smov [#allocation8]   ;;  %s49_s19 = int_to_ptr.vmem [resolvable:$true] %s48_s19 }
   0xb   :  { %54 = dma.hbm_to_vmem [thread:$0]  %s47_s15, 1024, %s49_s19, [#allocation6], %s538_s9, %s538_s9, %s539_s10  }
   0xc   :  { %s63_s20 = sshll.u32 %s542_s0, 4  ;;  %s64_s20 = int_to_ptr.vmem [resolvable:$true] %s63_s20 }
   0xd   :  { %69 = dma.hbm_to_vmem [thread:$0]  %s62_s17, 1024, %s64_s20, [#allocation9], %s538_s9, %s538_s9, %s539_s10  }
   0xe   :  { %529 = dma.done.wait [#allocation3], 32  }
   0xf   :  { %530 = vsyncadd [#allocation3], 4294967264 }
  0x10   :  { %531 = dma.done.wait [#allocation6], 1280  }
  0x11   :  { %532 = vsyncadd [#allocation6], 4294966016 }
  0x12   :  { %533 = dma.done.wait [#allocation9], 1024  }
  0x13   :  { %534 = vsyncadd [#allocation9], 4294966272  ;;  %v385_v0 = vld [vmem:[#allocation5 + $0x8] sm:$0xff]  ;;  %v384_v2 = vld [vmem:[#allocation5] sm:$0xff]  ;;  %vm110_vm0 = vcmask 261120   ;;  %s543_s24 = smov [#allocation10]  }
  0x14   :  { %v393_v1 = vld [vmem:[#allocation7 + $0x38] sm:$0xff]  ;;  %120 = vmatpush.bf16.msra.mxu0 %v385_v0  ;;  %v89_v3 = vld [vmem:[#allocation2] sm:$0x3]  ;;  %v392_v4 = vld [vmem:[#allocation7 + $0x30] sm:$0xff]  ;;  %s297_s25 = sshll.u32 %s543_s24, 4  ;;  %s298_s25 = int_to_ptr.vmem [resolvable:$true] %s297_s25 }
  0x15   :  { %196 = vmatpush.bf16.msra.mxu1 %v393_v1  ;;  %v96_v5 = vpack.c.bf16 %v89_v3, %v89_v3  ;;  %v391_v6 = vld [vmem:[#allocation7 + $0x28] sm:$0xff]  ;;  %v390_v7 = vld [vmem:[#allocation7 + $0x20] sm:$0xff]  ;;  %v389_v8 = vld [vmem:[#allocation7 + $0x18] sm:$0xff] }
  0x16   :  { %v388_v9 = vld [vmem:[#allocation7 + $0x10] sm:$0xff]  ;;  %v387_v10 = vld [vmem:[#allocation7 + $0x8] sm:$0xff]  ;;  %v386_v11 = vld [vmem:[#allocation7] sm:$0xff] }
  0x17   :  { %v401_v12 = vld [vmem:[#allocation8 + $0x38] sm:$0xff]  ;;  %v400_v13 = vld [vmem:[#allocation8 + $0x30] sm:$0xff]  ;;  %v399_v14 = vld [vmem:[#allocation8 + $0x28] sm:$0xff] }
  0x18   :  { %121 = vmatpush.bf16.msra.mxu0 %v384_v2  ;;  %278 = vmatpush.bf16.msra.mxu2 %v401_v12  ;;  %v398_v15 = vld [vmem:[#allocation8 + $0x20] sm:$0xff]  ;;  %v94_v16 = vld [vmem:[%s610_s2] sm:$0x1]  ;;  %v397_v17 = vld [vmem:[#allocation8 + $0x18] sm:$0xff] }
  0x19   :  { %197 = vmatpush.bf16.msra.mxu1 %v392_v4  ;;  %v95_v18 = vunpack.c.l.bf16 %v94_v16  ;;  %v396_v19 = vld [vmem:[#allocation8 + $0x10] sm:$0xff]  ;;  %v395_v26 = vld [vmem:[#allocation8 + $0x8] sm:$0xff]  ;;  %v394_v27 = vld [vmem:[#allocation8] sm:$0xff] }
  0x1a   :  { %v144_v28 = vld [vmem:[%s612_s4] sm:$0x1]  ;;  %s299_s4 = sshll.u32 %s615_s7, 4  ;;  %s300_s4 = int_to_ptr.hbm [resolvable:$true] %s299_s4 }
  0x1b   :  { %319 = vmatmul.msk.bf16.vlgmr.msra.gmra.mxu0 %vm110_vm0, %v96_v5  ;;  %v97_v20 = vperm.slane %v95_v18, 0  ;;  %v145_v29 = vunpack.c.l.bf16 %v144_v28  ;;  %v226_v36 = vld [vmem:[%s614_s6] sm:$0x1] }
  0x1c   :  { %279 = vmatpush.bf16.msra.mxu2 %v400_v13  ;;  %v227_v37 = vunpack.c.l.bf16 %v226_v36 }
  0x1d   :  { %198 = vmatpush.bf16.msra.mxu1 %v391_v6  ;;  %v147_v30 = vperm.slane %v145_v29, 0 }
  0x1e   :  { %v229_v38 = vperm.slane %v227_v37, 0 }
  0x20   :  { %280 = vmatpush.bf16.msra.mxu2 %v399_v14 }
  0x21   :  { %199 = vmatpush.bf16.msra.mxu1 %v390_v7 }
  0x24   :  { %281 = vmatpush.bf16.msra.mxu2 %v398_v15 }
  0x25   :  { %200 = vmatpush.bf16.msra.mxu1 %v389_v8 }
  0x28   :  { %282 = vmatpush.bf16.msra.mxu2 %v397_v17 }
  0x29   :  { %201 = vmatpush.bf16.msra.mxu1 %v388_v9 }
  0x2c   :  { %283 = vmatpush.bf16.msra.mxu2 %v396_v19 }
  0x2d   :  { %202 = vmatpush.bf16.msra.mxu1 %v387_v10 }
  0x30   :  { %284 = vmatpush.bf16.msra.mxu2 %v395_v26 }
  0x31   :  { %203 = vmatpush.bf16.msra.mxu1 %v386_v11 }
  0x34   :  { %285 = vmatpush.bf16.msra.mxu2 %v394_v27 }
  0x98   :  { %v123_v21 = vpop.f32.mrf.mxu0 }
  0x99   :  { %v124_v22 = vadd.f32 %v123_v21, %v97_v20 }
  0x9b   :  { %v127_v23 = vmax.f32 %v124_v22, 0.0 }
  0x9d   :  { %v146_v24 = vpack.c.bf16 %v127_v23, %v127_v23 }
  0x9f   :  { %204 = vmatmul.bf16.vlgmr.msra.gmra.mxu1 %v146_v24 }
  0xa0   :  { %v125_v25 = vpop.f32.mrf.mxu0 }
 0x11c   :  { %v205_v31 = vpop.f32.mrf.mxu1 }
 0x11d   :  { %v206_v32 = vadd.f32 %v205_v31, %v147_v30 }
 0x11f   :  { %v209_v33 = vmax.f32 %v206_v32, 0.0 }
 0x121   :  { %v228_v34 = vpack.c.bf16 %v209_v33, %v209_v33 }
 0x123   :  { %286 = vmatmul.bf16.vlgmr.msra.gmra.mxu2 %v228_v34 }
 0x124   :  { %v207_v35 = vpop.f32.mrf.mxu1 }
 0x1a6   :  { %v287_v39 = vpop.f32.mrf.mxu2 }
 0x1a7   :  { %v288_v40 = vadd.f32 %v287_v39, %v229_v38 }
 0x1a9   :  { %291 = vst [vmem:[#allocation10] sm:$0x3] %v288_v40 }
 0x1aa   :  { %302 = dma.vmem_to_hbm [thread:$0]  %s298_s25, 32, %s300_s4, [#allocation4]  }
 0x1ae   :  { %v289_v41 = vpop.f32.mrf.mxu2 }
 0x1af   :  { %535 = dma.done.wait [#allocation4], 32  }
 0x1b0   :  { %536 = vsyncadd [#allocation4], 4294967264 }
 0x1b1   :  { %307 = vsyncpa [#allocation3], 1 }
 0x1b2   :  { %308 = vsyncpa [#allocation6], 1 }
 0x1b3   :  { %309 = vsyncpa [#allocation9], 1 }
 0x1b4   :  { %310 = vsyncpa [#allocation4], 1 }

</bundles_post_ra>
